<compile_context>
chip_gen: v7x
topology: tpu7x:2x2x1
jax: 0.10.0
libtpu: 0.0.40
codegen_flags: <defaults>
</compile_context>

<pallas_src>
import functools

import numpy as np
import jax
import jax.numpy as jnp
from jax.experimental import pallas as pl
from jax.experimental.pallas import tpu as pltpu


# ----------------------------------------------------------------------------
# Host-side helpers: exact PyTorch adaptive-pool / bilinear matrices.
# ----------------------------------------------------------------------------
def adaptive_pool_matrix(in_size: int, out_size: int) -> np.ndarray:
    """M (out_size, in_size) such that M @ v == AdaptiveAvgPool1d(v)."""
    m = np.zeros((out_size, in_size), np.float32)
    for i in range(out_size):
        start = (i * in_size) // out_size
        end = -((-(i + 1) * in_size) // out_size)  # ceil((i+1)*in/out)
        m[i, start:end] = 1.0 / float(end - start)
    return m


def bilinear_matrix(out_size: int, in_size: int) -> np.ndarray:
    """U (out_size, in_size): bilinear interpolation, align_corners=True."""
    m = np.zeros((out_size, in_size), np.float32)
    if in_size == 1:
        m[:, 0] = 1.0
        return m
    if out_size == 1:
        m[0, 0] = 1.0
        return m
    scale = (in_size - 1) / (out_size - 1)
    for i in range(out_size):
        src = i * scale
        lo = int(np.floor(src))
        hi = min(lo + 1, in_size - 1)
        frac = src - lo
        m[i, lo] += 1.0 - frac
        m[i, hi] += frac
    return m


# ----------------------------------------------------------------------------
# Fused Pallas kernel: all branches + concat; grid = (batch, C tile).
# ----------------------------------------------------------------------------
def _pyramid_kernel(x_ref, pt_ref, u_ref, wc_ref, b_ref, m_ref, o_ref, acc_ref,
                    *, in_channels, c_tile):
    # x_ref : (1, C_TILE, HW)    input feature-map channel tile (lane-dense HW)
    # pt_ref: (HW, PP)           concat of kron(Ph,Pw).T over all branches
    # u_ref : (PP, HW)           concat of kron(Uh,Uw).T over all branches
    # wc_ref: (1, O, C_TILE)     stacked 1x1-conv weights (BN scale folded), C tile
    # b_ref : (O, 1)             stacked folded BN bias (f32)
    # m_ref : (O, PP)            block-diagonal branch mask (f32)
    # o_ref : (1, C + O, HW)     resident output block for this batch element
    # acc_ref: (O, PP) f32       conv-contraction accumulator across C tiles
    ct = pl.program_id(1)
    n_ct = pl.num_programs(1)

    x = x_ref[0]                                            # (C_TILE, HW)

    # --- channel-concat write-through of this x tile (already in VMEM) ---
    c0 = pl.multiple_of(ct * c_tile, c_tile)
    o_ref[0, pl.ds(c0, c_tile), :] = x.astype(o_ref.dtype)

    # --- adaptive avg-pool of this C tile for ALL branches: one 2-D matmul ---
    pooled = jnp.dot(x, pt_ref[...],
                     preferred_element_type=jnp.float32)    # (C_TILE, PP)

    # --- stacked 1x1-conv contraction over C, accumulated across C tiles ---
    @pl.when(ct == 0)
    def _():
        acc_ref[...] = jnp.zeros_like(acc_ref)

    acc_ref[...] += jnp.dot(wc_ref[0], pooled,
                            preferred_element_type=jnp.float32)  # (O, PP)

    # --- finalize on last C tile: bias + ReLU + branch mask, ONE upsample
    #     matmul, one contiguous lane-dense store of the whole branch slab ---
    @pl.when(ct == n_ct - 1)
    def _():
        y = jnp.maximum(acc_ref[...] + b_ref[...], 0.0) * m_ref[...]  # (O, PP)
        out_b = jnp.dot(y.astype(u_ref.dtype), u_ref[...],
                        preferred_element_type=jnp.float32)           # (O, HW)
        o_ref[0, in_channels:, :] = out_b.astype(o_ref.dtype)


def pyramid_pooling_forward(x, pt, u_all, wc_stacked, b_stacked, mask,
                            height, width, *, c_tile=None):
    """Fused PyramidPooling forward: returns cat([x, out1..out4], axis=1)."""
    N, C, H, W = x.shape
    assert H == height and W == width, "concat requires matching spatial size"
    HW = H * W
    O, Cw = wc_stacked.shape                      # O = NB * out_channels
    assert Cw == C
    PP = pt.shape[1]
    Ctot = C + O

    if c_tile is None:
        c_tile = min(C, 256)
    assert C % c_tile == 0 and (c_tile % 8 == 0 or c_tile == C), \
        "c_tile must divide C and be sublane-aligned"
    num_ct = C // c_tile

    x2 = x.reshape(N, C, HW)                      # lane-dense spatial axis
    # Pre-split conv weights along C so each grid step DMAs only its tile.
    wc_split = wc_stacked.reshape(O, num_ct, c_tile).transpose(1, 0, 2)

    # --- VMEM budget derived from the actual block sizes (double-buffered) ---
    isz = x2.dtype.itemsize
    x_blk = c_tile * HW * isz
    o_blk = Ctot * HW * isz
    wc_blk = O * c_tile * wc_split.dtype.itemsize
    resident = (pt.size * pt.dtype.itemsize + u_all.size * u_all.dtype.itemsize
                + mask.size * mask.dtype.itemsize
                + b_stacked.size * b_stacked.dtype.itemsize
                + O * PP * 4)                     # f32 accumulator scratch
    vmem_limit = int(min(100 << 20,
                         max(16 << 20,
                             2 * (2 * x_blk + 2 * o_blk + 2 * wc_blk + resident))))

    flops = N * (2 * C * HW * PP + 2 * O * C * PP + 2 * O * PP * HW)
    bytes_accessed = (x2.size * isz + N * Ctot * HW * isz
                      + pt.size * pt.dtype.itemsize
                      + u_all.size * u_all.dtype.itemsize
                      + wc_split.size * wc_split.dtype.itemsize
                      + b_stacked.size * b_stacked.dtype.itemsize
                      + mask.size * mask.dtype.itemsize)

    kernel = functools.partial(_pyramid_kernel, in_channels=C, c_tile=c_tile)

    out2 = pl.pallas_call(
        kernel,
        out_shape=jax.ShapeDtypeStruct((N, Ctot, HW), x.dtype),
        grid_spec=pltpu.PrefetchScalarGridSpec(
            num_scalar_prefetch=0,
            grid=(N, num_ct),
            in_specs=[
                pl.BlockSpec((1, c_tile, HW), lambda n, ct: (n, ct, 0)),
                pl.BlockSpec((HW, PP), lambda n, ct: (0, 0)),
                pl.BlockSpec((PP, HW), lambda n, ct: (0, 0)),
                pl.BlockSpec((1, O, c_tile), lambda n, ct: (ct, 0, 0)),
                pl.BlockSpec((O, 1), lambda n, ct: (0, 0)),
                pl.BlockSpec((O, PP), lambda n, ct: (0, 0)),
            ],
            out_specs=pl.BlockSpec((1, Ctot, HW), lambda n, ct: (n, 0, 0)),
            scratch_shapes=[pltpu.VMEM((O, PP), jnp.float32)],
        ),
        compiler_params=pltpu.CompilerParams(
            dimension_semantics=("parallel", "arbitrary"),
            vmem_limit_bytes=vmem_limit,
        ),
        cost_estimate=pl.CostEstimate(flops=flops, transcendentals=0,
                                      bytes_accessed=int(bytes_accessed)),
    )(x2, pt, u_all, wc_split, b_stacked, mask)

    return out2.reshape(N, Ctot, H, W)


# ----------------------------------------------------------------------------
# Demo / correctness check.
# ----------------------------------------------------------------------------
if __name__ == "__main__":
    key = jax.random.PRNGKey(0)
    N, C, H, W = 2, 32, 16, 16
    pool_sizes = (6, 3, 2, 1)
    height, width = H, W
    NB = len(pool_sizes)
    Cout = C // NB                                # 8
    eps = 1e-5

    keys = jax.random.split(key, 1 + 5 * NB)
    x = jax.random.normal(keys[0], (N, C, H, W), jnp.float32)

    wc_list, b_list, pt_blocks, u_blocks, ref_mats = [], [], [], [], []
    ki = 1
    for p in pool_sizes:
        wc = jax.random.normal(keys[ki], (Cout, C), jnp.float32) * 0.2
        gamma = 1.0 + 0.1 * jax.random.normal(keys[ki + 1], (Cout,), jnp.float32)
        beta = 0.1 * jax.random.normal(keys[ki + 2], (Cout,), jnp.float32)
        r_mean = 0.1 * jax.random.normal(keys[ki + 3], (Cout,), jnp.float32)
        r_var = jax.random.uniform(keys[ki + 4], (Cout,), jnp.float32,
                                   minval=0.5, maxval=1.5)
        ki += 5

        scale = gamma / jnp.sqrt(r_var + eps)
        wc_list.append(wc * scale[:, None])           # conv w/ BN scale folded
        b_list.append(beta - r_mean * scale)          # folded BN bias

        ph = adaptive_pool_matrix(H, p)               # (p, H)
        pw = adaptive_pool_matrix(W, p)               # (p, W)
        uh = bilinear_matrix(height, p)               # (Hout, p)
        uw = bilinear_matrix(width, p)                # (Wout, p)
        pt_blocks.append(np.kron(ph, pw).T)           # (H*W, p*p)
        u_blocks.append(np.kron(uh, uw).T)            # (p*p, Hout*Wout)
        ref_mats.append((jnp.asarray(ph), jnp.asarray(pw),
                         jnp.asarray(uh), jnp.asarray(uw)))

    pool_pp = [p * p for p in pool_sizes]
    PP = sum(pool_pp)

    pt = jnp.asarray(np.concatenate(pt_blocks, axis=1))       # (HW, PP)
    u_all = jnp.asarray(np.concatenate(u_blocks, axis=0))     # (PP, HW)
    wc_stacked = jnp.concatenate(wc_list, axis=0)              # (NB*Cout, C)
    b_stacked = jnp.concatenate(b_list, axis=0)[:, None]       # (NB*Cout, 1)

    # Block-diagonal branch mask: rows of branch b keep only branch b's PP cols.
    mask_np = np.zeros((NB * Cout, PP), np.float32)
    off = 0
    for b, pp in enumerate(pool_pp):
        mask_np[b * Cout:(b + 1) * Cout, off:off + pp] = 1.0
        off += pp
    mask = jnp.asarray(mask_np)

    out = pyramid_pooling_forward(x, pt, u_all, wc_stacked, b_stacked, mask,
                                  height, width, c_tile=16)
    out = jax.block_until_ready(out)

    # Pure-JAX reference (per-branch separable matrices, identical math).
    ref_outs = [x]
    for (wc_fold, bias_fold), (ph, pw, uh, uw) in zip(zip(wc_list, b_list),
                                                      ref_mats):
        t = jnp.einsum('nchw,qw->nchq', x, pw)
        pooled = jnp.einsum('ph,nchq->ncpq', ph, t)
        y = jnp.einsum('oc,ncpq->nopq', wc_fold, pooled) \
            + bias_fold[None, :, None, None]
        y = jnp.maximum(y, 0.0)
        r = jnp.einsum('hp,nopq->nohq', uh, y)
        ref_outs.append(jnp.einsum('nohq,wq->nohw', r, uw))
    ref = jnp.concatenate(ref_outs, axis=1)

    assert out.shape == (N, C + Cout * NB, height, width), out.shape
    np.testing.assert_allclose(np.asarray(out), np.asarray(ref),
                               rtol=1e-3, atol=1e-3)
    print("KERNEL_OK")
</pallas_src>

<mosaic_0001>
module attributes {stable_mosaic.version = 11 : i64} {
  func.func @_pyramid_kernel(%arg0: i32, %arg1: i32, %arg2: memref<1x16x256xf32, #tpu.memory_space<vmem>>, %arg3: memref<256x50xf32, #tpu.memory_space<vmem>>, %arg4: memref<50x256xf32, #tpu.memory_space<vmem>>, %arg5: memref<1x32x16xf32, #tpu.memory_space<vmem>>, %arg6: memref<32x1xf32, #tpu.memory_space<vmem>>, %arg7: memref<32x50xf32, #tpu.memory_space<vmem>>, %arg8: memref<1x64x256xf32, #tpu.memory_space<vmem>>, %arg9: memref<32x50xf32, #tpu.memory_space<vmem>>) attributes {dimension_semantics = [#tpu.dimension_semantics<parallel>, #tpu.dimension_semantics<arbitrary>], iteration_bounds = array<i64: 2, 2>, scalar_prefetch = 0 : i64, scratch_operands = 1 : i64, tpu.core_type = #tpu.core_type<tc>, window_params = [{transform_indices = @transform_0, window_bounds = array<i64: 1, 16, 256>}, {pipeline_mode = #tpu.pipeline_mode<synchronous>, transform_indices = @transform_1, window_bounds = array<i64: 256, 50>}, {pipeline_mode = #tpu.pipeline_mode<synchronous>, transform_indices = @transform_2, window_bounds = array<i64: 50, 256>}, {transform_indices = @transform_3, window_bounds = array<i64: 1, 32, 16>}, {pipeline_mode = #tpu.pipeline_mode<synchronous>, transform_indices = @transform_4, window_bounds = array<i64: 32, 1>}, {pipeline_mode = #tpu.pipeline_mode<synchronous>, transform_indices = @transform_5, window_bounds = array<i64: 32, 50>}, {transform_indices = @transform_6, window_bounds = array<i64: 1, 64, 256>}]} {
    %c0 = arith.constant 0 : index
    %c0_0 = arith.constant 0 : index
    %c0_1 = arith.constant 0 : index
    %0 = vector.load %arg2[%c0, %c0_0, %c0_1] : memref<1x16x256xf32, #tpu.memory_space<vmem>>, vector<1x16x256xf32>
    %1 = vector.shape_cast %0 : vector<1x16x256xf32> to vector<16x256xf32>
    %c16_i32 = arith.constant 16 : i32
    %2 = arith.muli %arg1, %c16_i32 : i32
    %3 = tpu.assume_multiple %2, 16 : i32
    %c0_2 = arith.constant 0 : index
    %4 = arith.index_cast %3 : i32 to index
    %c0_3 = arith.constant 0 : index
    %5 = vector.load %arg8[%c0_2, %4, %c0_3] : memref<1x64x256xf32, #tpu.memory_space<vmem>>, vector<1x16x256xf32>
    %6 = vector.shape_cast %5 : vector<1x16x256xf32> to vector<16x256xf32>
    %7 = vector.shape_cast %1 : vector<16x256xf32> to vector<1x16x256xf32>
    tpu.vector_store %arg8[%c0_2, %4, %c0_3], %7 {strides = array<i32>} : memref<1x64x256xf32, #tpu.memory_space<vmem>>, vector<1x16x256xf32>,
    %c0_4 = arith.constant 0 : index
    %c0_5 = arith.constant 0 : index
    %8 = vector.load %arg3[%c0_4, %c0_5] : memref<256x50xf32, #tpu.memory_space<vmem>>, vector<256x50xf32>
    %cst = arith.constant dense<0.000000e+00> : vector<16x50xf32>
    %9 = tpu.matmul %1, %8, %cst {dimension_numbers = #tpu.dot_dimension_numbers<[1], [0], [0], [1], [0, 0, 1, 1], [], []>} : vector<16x256xf32>, vector<256x50xf32>, vector<16x50xf32> -> vector<16x50xf32>
    %c0_i32 = arith.constant 0 : i32
    %10 = arith.cmpi eq, %arg1, %c0_i32 : i32
    %11 = arith.extui %10 : i1 to i32
    %c0_i32_6 = arith.constant 0 : i32
    %12 = arith.cmpi ne, %11, %c0_i32_6 : i32
    scf.if %12 {
      %cst_16 = arith.constant 0.000000e+00 : f32
      %22 = vector.broadcast %cst_16 : f32 to vector<32x50xf32>
      %c0_17 = arith.constant 0 : index
      %c0_18 = arith.constant 0 : index
      %23 = vector.load %arg9[%c0_17, %c0_18] : memref<32x50xf32, #tpu.memory_space<vmem>>, vector<32x50xf32>
      tpu.vector_store %arg9[%c0_17, %c0_18], %22 {strides = array<i32>} : memref<32x50xf32, #tpu.memory_space<vmem>>, vector<32x50xf32>,
    } else {
    }
    %c0_7 = arith.constant 0 : index
    %c0_8 = arith.constant 0 : index
    %13 = vector.load %arg9[%c0_7, %c0_8] : memref<32x50xf32, #tpu.memory_space<vmem>>, vector<32x50xf32>
    %c0_9 = arith.constant 0 : index
    %c0_10 = arith.constant 0 : index
    %c0_11 = arith.constant 0 : index
    %14 = vector.load %arg5[%c0_9, %c0_10, %c0_11] : memref<1x32x16xf32, #tpu.memory_space<vmem>>, vector<1x32x16xf32>
    %15 = vector.shape_cast %14 : vector<1x32x16xf32> to vector<32x16xf32>
    %cst_12 = arith.constant dense<0.000000e+00> : vector<32x50xf32>
    %16 = tpu.matmul %15, %9, %cst_12 {dimension_numbers = #tpu.dot_dimension_numbers<[1], [0], [0], [1], [0, 0, 1, 1], [], []>} : vector<32x16xf32>, vector<16x50xf32>, vector<32x50xf32> -> vector<32x50xf32>
    %17 = arith.addf %13, %16 : vector<32x50xf32>
    %c0_13 = arith.constant 0 : index
    %c0_14 = arith.constant 0 : index
    %18 = vector.load %arg9[%c0_13, %c0_14] : memref<32x50xf32, #tpu.memory_space<vmem>>, vector<32x50xf32>
    tpu.vector_store %arg9[%c0_13, %c0_14], %17 {strides = array<i32>} : memref<32x50xf32, #tpu.memory_space<vmem>>, vector<32x50xf32>,
    %c1_i32 = arith.constant 1 : i32
    %19 = arith.cmpi eq, %arg1, %c1_i32 : i32
    %20 = arith.extui %19 : i1 to i32
    %c0_i32_15 = arith.constant 0 : i32
    %21 = arith.cmpi ne, %20, %c0_i32_15 : i32
    scf.if %21 {
      %c0_16 = arith.constant 0 : index
      %c0_17 = arith.constant 0 : index
      %22 = vector.load %arg9[%c0_16, %c0_17] : memref<32x50xf32, #tpu.memory_space<vmem>>, vector<32x50xf32>
      %c0_18 = arith.constant 0 : index
      %c0_19 = arith.constant 0 : index
      %23 = vector.load %arg6[%c0_18, %c0_19] : memref<32x1xf32, #tpu.memory_space<vmem>>, vector<32x1xf32>
      %24 = vector.broadcast %23 : vector<32x1xf32> to vector<32x50xf32>
      %25 = arith.addf %22, %24 : vector<32x50xf32>
      %cst_20 = arith.constant 0.000000e+00 : f32
      %26 = vector.broadcast %cst_20 : f32 to vector<32x50xf32>
      %27 = arith.maximumf %25, %26 : vector<32x50xf32>
      %c0_21 = arith.constant 0 : index
      %c0_22 = arith.constant 0 : index
      %28 = vector.load %arg7[%c0_21, %c0_22] : memref<32x50xf32, #tpu.memory_space<vmem>>, vector<32x50xf32>
      %29 = arith.mulf %27, %28 : vector<32x50xf32>
      %c0_23 = arith.constant 0 : index
      %c0_24 = arith.constant 0 : index
      %30 = vector.load %arg4[%c0_23, %c0_24] : memref<50x256xf32, #tpu.memory_space<vmem>>, vector<50x256xf32>
      %cst_25 = arith.constant dense<0.000000e+00> : vector<32x256xf32>
      %31 = tpu.matmul %29, %30, %cst_25 {dimension_numbers = #tpu.dot_dimension_numbers<[1], [0], [0], [1], [0, 0, 1, 1], [], []>} : vector<32x50xf32>, vector<50x256xf32>, vector<32x256xf32> -> vector<32x256xf32>
      %c0_26 = arith.constant 0 : index
      %c32 = arith.constant 32 : index
      %c0_27 = arith.constant 0 : index
      %32 = vector.load %arg8[%c0_26, %c32, %c0_27] : memref<1x64x256xf32, #tpu.memory_space<vmem>>, vector<1x32x256xf32>
      %33 = vector.shape_cast %32 : vector<1x32x256xf32> to vector<32x256xf32>
      %34 = vector.shape_cast %31 : vector<32x256xf32> to vector<1x32x256xf32>
      tpu.vector_store %arg8[%c0_26, %c32, %c0_27], %34 {strides = array<i32>} : memref<1x64x256xf32, #tpu.memory_space<vmem>>, vector<1x32x256xf32>,
    } else {
    }
    return
  }
  func.func @transform_0(%arg0: i32, %arg1: i32) -> (i32, i32, i32) {
    %c0_i32 = arith.constant 0 : i32
    %c0_i32_0 = arith.constant 0 : i32
    return %arg0, %arg1, %c0_i32 : i32, i32, i32
  }
  func.func @transform_1(%arg0: i32, %arg1: i32) -> (i32, i32) {
    %c0_i32 = arith.constant 0 : i32
    %c0_i32_0 = arith.constant 0 : i32
    %c0_i32_1 = arith.constant 0 : i32
    return %c0_i32, %c0_i32_0 : i32, i32
  }
  func.func @transform_2(%arg0: i32, %arg1: i32) -> (i32, i32) {
    %c0_i32 = arith.constant 0 : i32
    %c0_i32_0 = arith.constant 0 : i32
    %c0_i32_1 = arith.constant 0 : i32
    return %c0_i32, %c0_i32_0 : i32, i32
  }
  func.func @transform_3(%arg0: i32, %arg1: i32) -> (i32, i32, i32) {
    %c0_i32 = arith.constant 0 : i32
    %c0_i32_0 = arith.constant 0 : i32
    %c0_i32_1 = arith.constant 0 : i32
    return %arg1, %c0_i32, %c0_i32_0 : i32, i32, i32
  }
  func.func @transform_4(%arg0: i32, %arg1: i32) -> (i32, i32) {
    %c0_i32 = arith.constant 0 : i32
    %c0_i32_0 = arith.constant 0 : i32
    %c0_i32_1 = arith.constant 0 : i32
    return %c0_i32, %c0_i32_0 : i32, i32
  }
  func.func @transform_5(%arg0: i32, %arg1: i32) -> (i32, i32) {
    %c0_i32 = arith.constant 0 : i32
    %c0_i32_0 = arith.constant 0 : i32
    %c0_i32_1 = arith.constant 0 : i32
    return %c0_i32, %c0_i32_0 : i32, i32
  }
  func.func @transform_6(%arg0: i32, %arg1: i32) -> (i32, i32, i32) {
    %c0_i32 = arith.constant 0 : i32
    %c0_i32_0 = arith.constant 0 : i32
    %c0_i32_1 = arith.constant 0 : i32
    return %arg0, %c0_i32, %c0_i32_0 : i32, i32, i32
  }
}

</mosaic_0001>

<bundles_post_ra>
// kernel: tpu_custom_call.1
= control target key start
LH: loop header
LB: loop body
LE: loop exit
PB: predicated region body
PF: predicated region fallthrough
CT: control target
= control target key end

     0   :  { %s1533_s0 = inlined_call_operand.vmem [shape: f32[2,32,256], index: 0, kind: input, shape index: {}]   ;;  %s1534_s1 = inlined_call_operand.vmem [shape: f32[256,50], index: 1, kind: input, shape index: {}]   ;;  %s1535_s2 = inlined_call_operand.vmem [shape: f32[50,256], index: 2, kind: input, shape index: {}]   ;;  %s1536_s3 = inlined_call_operand.vmem [shape: f32[2,32,16], index: 3, kind: input, shape index: {}]   ;;  %s1537_s4 = inlined_call_operand.vmem [shape: f32[32,1], index: 4, kind: input, shape index: {}]   ;;  %s1538_s5 = inlined_call_operand.vmem [shape: f32[32,50], index: 5, kind: input, shape index: {}]   ;;  %s1539_s6 = inlined_call_operand.hbm [shape: f32[2,64,256], index: 6, kind: output, shape index: {}]  }
   0x1   :  { %1545 = sst [smem:[#allocation12_spill]] %s1536_s3 }
   0x2   :  { %11 = vsyncpa [#allocation4], 0 }
   0x3   :  { %13 = vsyncpa [#allocation4 + $0x1], 0  ;;  %s1194_s21 = smov 0   ;;  %s1196_s22 = smov 0  }
   0x4   :  { %s1198_s23 = smov 0   ;;  %s1200_s24 = smov 0  }
   0x5   :  { %s1202_s25 = smov 0   ;;  %s1204_s26 = smov 0  }
   0x6   :  { %s1206_s27 = smov 0   ;;  %s1208_s28 = smov 0  }
   0x7 LB: > { %1546 = sst [smem:[#allocation6_spill]] %s1131_s23  ;;  %s834_s29 = sadd.s32 4294967295, %s1151_s28   ;;  %s1151_s28 = sphi %s1208_s28, %s19_s28   ;;  %s1147_s27 = sphi %s1206_s27, %s1561_s27   ;;  %s1143_s26 = sphi %s1204_s26, %s1560_s26   ;;  %s1139_s25 = sphi %s1202_s25, %s1559_s25   ;;  %s1135_s24 = sphi %s1200_s24, %s1558_s24   ;;  %s1131_s23 = sphi %s1198_s23, %s1557_s23   ;;  %s1127_s22 = sphi %s1196_s22, %s1563_s22   ;;  %s1123_s21 = sphi %s1194_s21, %s1562_s21  }
   0x8   : > { %1547 = sst [smem:[#allocation7_spill]] %s1143_s26  ;;  %s835_s30 = sadd.s32 4294967294, %s1151_s28  }
   0x9   : > { %1548 = sst [smem:[#allocation8_spill]] %s1147_s27  ;;  %s28_s7 = sadd.s32 1, %s1143_s26 }
   0xa   : > { %p29_p0 = scmp.ge.s32.totalorder %s28_s7, 2  ;;  %s31_s8 = sadd.s32 1, %s1147_s27 }
   0xb   : > { %p186_p1 = scmp.ne.s32.totalorder %s1131_s23, %s1127_s22  ;;  %p187_p2 = scmp.eq.s32.totalorder %s834_s29, 3 }
   0xc   : > { %s1565_s7 = smov (%p29_p0, %s28_s7), 0  ;;  %s1567_s8 = smov (!%p29_p0, %s31_s8), %s1147_s27 }
   0xd   : > { %1549 = sst [smem:[#allocation9_spill]] %s1565_s7  ;;  %p1243_p3 = por %p187_p2, %p186_p1 }
   0xe   : > { %p192_p4 = scmp.ne.s32.totalorder %s1127_s22, %s1123_s21  ;;  %p33_p5 = scmp.ge.s32.totalorder %s1567_s8, 2 }
   0xf   : > { %p193_p6 = scmp.eq.s32.totalorder %s835_s30, 3  ;;  %p838_p7 = scmp.ge.s32.totalorder %s1151_s28, 1 }
  0x10   : > { %p245_p8 = scmp.lt.s32.totalorder %s1151_s28, 5  ;;  %s1569_s8 = smov (%p33_p5, %s1567_s8), 0 }
  0x11   : > { %1551 = sst [smem:[#allocation10_spill]] %s1569_s8  ;;  %p1253_p9 = por %p193_p6, %p192_p4 }
  0x12   : > { %p246_p10 = pnand %p838_p7, %p245_p8  ;;  %s173_s11 = ssub.s32 %s1147_s27, %s1569_s8 }
  0x13   : > { %s176_s12 = sadd.s32 1, %s1131_s23  ;;  %p174_p11 = scmp.eq.s32.totalorder %s173_s11, 0  ;;  %v331_v0 = vld [vmem:[%s1534_s1 + $0x80] sm:$0xff] (!%p246_p10)  ;;  %v332_v1 = vld [vmem:[%s1534_s1 + $0x88] sm:$0xff] (!%p246_p10)  ;;  %v333_v5 = vld [vmem:[%s1534_s1 + $0x90] sm:$0xff] (!%p246_p10) }
  0x14   : > { %249 = sbr.rel (%p246_p10) target bundleno = 757 (0x2f5), region = 44  ;;  %p296_p12 = scmp.lt.s32.totalorder (!%p246_p10), %s1135_s24, 1  ;;  %v315_v2 = vld [vmem:[%s1534_s1] sm:$0xff] (!%p246_p10)  ;;  %v923_v3 = vpack.c.bf16 (!%p246_p10), %v332_v1, %v331_v0  ;;  %v316_v4 = vld [vmem:[%s1534_s1 + $0x8] sm:$0xff] (!%p246_p10)  ;;  %v334_v6 = vld [vmem:[%s1534_s1 + $0x98] sm:$0xff] (!%p246_p10) }
  0x15   : > { %s1261_s13 = scalar_select %p174_p11, %s1131_s23, %s176_s12  }
  0x16   : > { %s1541_s20 = sand.u32 (!%p246_p10), 1, %s1127_s22   ;;  %s840_s17 = sshll.u32 (!%p246_p10), %s1135_s24, 1  ;;  %v925_v7 = vpack.c.bf16 (!%p246_p10), %v316_v4, %v315_v2  ;;  %v927_v8 = vpack.c.bf16 (!%p246_p10), %v334_v6, %v333_v5  ;;  %v317_v9 = vld [vmem:[%s1534_s1 + $0x10] sm:$0xff] (!%p246_p10)  ;;  %v318_v10 = vld [vmem:[%s1534_s1 + $0x18] sm:$0xff] (!%p246_p10)  ;;  %v335_v11 = vld [vmem:[%s1534_s1 + $0xa0] sm:$0xff] (!%p246_p10)  ;;  %924 = vmatprep.subr.bf16.mxu0 (!%p246_p10), %v923_v3 }
  0x17   : > { %1553 = sst [smem:[#allocation11_spill]] %s1261_s13  ;;  %s1285_s16 = sshll.u32 (!%p246_p10), %s1541_s20, 7  ;;  %v336_v12 = vld [vmem:[%s1534_s1 + $0xa8] sm:$0xff] (!%p246_p10)  ;;  %v929_v13 = vpack.c.bf16 (!%p246_p10), %v318_v10, %v317_v9  ;;  %v319_v15 = vld [vmem:[%s1534_s1 + $0x20] sm:$0xff] (!%p246_p10)  ;;  %v337_v17 = vld [vmem:[%s1534_s1 + $0xb0] sm:$0xff] (!%p246_p10) }
  0x18   : > { %p286_p13 = scmp.lt.s32.totalorder (!%p246_p10), %s1139_s25, 1  ;;  %926 = vmatpush3.bf16.msra.mxu0 (!%p246_p10), %v925_v7  ;;  %p288_p0 = scmp.lt.s32.totalorder (!%p246_p10), %s840_s17, 3  ;;  %v931_v14 = vpack.c.bf16 (!%p246_p10), %v336_v12, %v335_v11  ;;  %v320_v16 = vld [vmem:[%s1534_s1 + $0x28] sm:$0xff] (!%p246_p10)  ;;  %v338_v18 = vld [vmem:[%s1534_s1 + $0xb8] sm:$0xff] (!%p246_p10)  ;;  %v321_v21 = vld [vmem:[%s1534_s1 + $0x30] sm:$0xff] (!%p246_p10) }
  0x19   : > { %s1554_s3 = sld [smem:[#allocation12_spill]] (!%p246_p10)  ;;  %928 = vmatprep.subr.bf16.mxu0 (!%p246_p10), %v927_v8  ;;  %s846_s14 = sshll.u32 (!%p246_p10), %s1135_s24, 4  ;;  %v933_v19 = vpack.c.bf16 (!%p246_p10), %v320_v16, %v319_v15  ;;  %v935_v20 = vpack.c.bf16 (!%p246_p10), %v338_v18, %v337_v17  ;;  %v322_v22 = vld [vmem:[%s1534_s1 + $0x38] sm:$0xff] (!%p246_p10)  ;;  %v339_v23 = vld [vmem:[%s1534_s1 + $0xc0] sm:$0xff] (!%p246_p10)  ;;  %v340_v24 = vld [vmem:[%s1534_s1 + $0xc8] sm:$0xff] (!%p246_p10) }
  0x1a   : > { %s306_s19 = sshra.s32 (!%p246_p10), %s846_s14, 3  ;;  %s1334_s23 = scalar_lea.vmem (!%p246_p10), [#allocation3], %s1285_s16  ;;  %v937_v25 = vpack.c.bf16 (!%p246_p10), %v322_v22, %v321_v21  ;;  %v323_v26 = vld [vmem:[%s1534_s1 + $0x40] sm:$0xff] (!%p246_p10)  ;;  %v324_v27 = vld [vmem:[%s1534_s1 + $0x48] sm:$0xff] (!%p246_p10)  ;;  %v939_v28 = vpack.c.bf16 (!%p246_p10), %v340_v24, %v339_v23  ;;  %v341_v32 = vld [vmem:[%s1534_s1 + $0xd0] sm:$0xff] (!%p246_p10) }
  0x1b   : > { %s297_s18 = scalar_select %p296_p12, %s1135_s24, 1  ;;  %v342_v33 = vld [vmem:[%s1534_s1 + $0xd8] sm:$0xff]  ;;  %v941_v35 = vpack.c.bf16 %v324_v27, %v323_v26  ;;  %v325_v37 = vld [vmem:[%s1534_s1 + $0x50] sm:$0xff]  ;;  %v343_v39 = vld [vmem:[%s1534_s1 + $0xe0] sm:$0xff] }
  0x1c   : > { %s1571_s17 = smov (!%p288_p0, %s840_s17), 3  ;;  %930 = vmatpush3.bf16.msra.mxu0 %v929_v13  ;;  %s867_s26 = sshll.u32 %s306_s19, 4  ;;  %v943_v36 = vpack.c.bf16 %v342_v33, %v341_v32  ;;  %v326_v38 = vld [vmem:[%s1534_s1 + $0x58] sm:$0xff]  ;;  %v344_v40 = vld [vmem:[%s1534_s1 + $0xe8] sm:$0xff]  ;;  %v327_v43 = vld [vmem:[%s1534_s1 + $0x60] sm:$0xff] }
  0x1d   : > { %s866_s20 = sshll.u32 %s297_s18, 5  ;;  %932 = vmatprep.subr.bf16.mxu0 %v931_v14  ;;  %s841_s18 = sshll.u32 %s1571_s17, 1  ;;  %v945_v41 = vpack.c.bf16 %v326_v38, %v325_v37  ;;  %v947_v42 = vpack.c.bf16 %v344_v40, %v343_v39  ;;  %v328_v44 = vld [vmem:[%s1534_s1 + $0x68] sm:$0xff]  ;;  %v345_v45 = vld [vmem:[%s1534_s1 + $0xf0] sm:$0xff]  ;;  %v346_v46 = vld [vmem:[%s1534_s1 + $0xf8] sm:$0xff] }
  0x1e   : > { %s310_s7 = scalar_lea.vmem %s1334_s23, %s867_s26 [#allocation3]  ;;  %v949_v47 = vpack.c.bf16 %v328_v44, %v327_v43  ;;  %v951_v48 = vpack.c.bf16 %v346_v46, %v345_v45  ;;  %v329_v49 = vld [vmem:[%s1534_s1 + $0x70] sm:$0xff]  ;;  %v330_v50 = vld [vmem:[%s1534_s1 + $0x78] sm:$0xff]  ;;  %p849_p1 = scmp.ne.s32.totalorder %s1135_s24, 0 }
  0x1f   : > { %s1305_s29 = scalar_lea.vmem %s1554_s3, %s866_s20  ;;  %v953_v51 = vpack.c.bf16 %v330_v50, %v329_v49  ;;  %vm426_vm0 = vcmask (!%p849_p1), 408576   ;;  %v1153_v58 = vmov (!%p849_p1), 0.0  }
  0x20   : > { %s287_s20 = scalar_select %p286_p13, %s1139_s25, 1  ;;  %934 = vmatpush3.bf16.msra.mxu0 %v933_v19 }
  0x21   : > { %936 = vmatprep.subr.bf16.mxu0 %v935_v20  ;;  %427 = vst.msk [vmem:[#allocation2] sm:$0xff] (!%p849_p1), %vm426_vm0, %v1153_v58  ;;  %428 = vst.msk [vmem:[#allocation2 + $0x8] sm:$0xff] (!%p849_p1), %vm426_vm0, %v1153_v58 }
  0x22   : > { %s842_s8 = sshll.u32 %s287_s20, 3  ;;  %429 = vst.msk [vmem:[#allocation2 + $0x10] sm:$0xff] (!%p849_p1), %vm426_vm0, %v1153_v58  ;;  %430 = vst.msk [vmem:[#allocation2 + $0x18] sm:$0xff] (!%p849_p1), %vm426_vm0, %v1153_v58 }
  0x23   : > { %s292_s14 = sadd.s32 %s842_s8, %s841_s18 }
  0x24   : > { %s843_s20 = sshll.u32 %s292_s14, 3  ;;  %938 = vmatpush3.bf16.msra.mxu0 %v937_v25 }
  0x25   : > { %s294_s3 = scalar_lea.vmem %s1533_s0, %s843_s20  ;;  %940 = vmatprep.subr.bf16.mxu0 %v939_v28 }
  0x26   : > { %v302_v29 = vld [vmem:[%s294_s3 + $0x8] sm:$0xff]  ;;  %v301_v30 = vld [vmem:[%s294_s3] sm:$0xff]  ;;  %v304_v31 = vld [vmem:[%s294_s3 + $0x18] sm:$0xff] }
  0x27   : > { %312 = vst [vmem:[%s310_s7 + $0x8] sm:$0xff] %v302_v29  ;;  %411 = vmatprep.mubr.f32.mxu0 %v302_v29  ;;  %311 = vst [vmem:[%s310_s7] sm:$0xff] %v301_v30  ;;  %v303_v34 = vld [vmem:[%s294_s3 + $0x10] sm:$0xff] }
  0x28   : > { %314 = vst [vmem:[%s310_s7 + $0x18] sm:$0xff] %v304_v31  ;;  %313 = vst [vmem:[%s310_s7 + $0x10] sm:$0xff] %v303_v34  ;;  %942 = vmatpush3.bf16.msra.mxu0 %v941_v35 }
  0x29   : > { %944 = vmatprep.subr.bf16.mxu0 %v943_v36 }
  0x2c   : > { %946 = vmatpush3.bf16.msra.mxu0 %v945_v41 }
  0x2d   : > { %948 = vmatprep.subr.bf16.mxu0 %v947_v42 }
  0x30   : > { %950 = vmatpush3.bf16.msra.mxu0 %v949_v47 }
  0x31   : > { %952 = vmatprep.subr.bf16.mxu0 %v951_v48 }
  0x34   : > { %954 = vmatpush3.bf16.msra.mxu0 %v953_v51 }
  0x37   : > { %412 = vmatmul.mubr.f32.vlgmr.msra.gmra.mrb[0].mxu0 %v301_v30 }
  0x38   : > { %416 = vmatprep.mubr.f32.mxu0 %v304_v31 }
  0x3b   : > { %417 = vmatmul.mubr.f32.gmra.mrb[2].mxu0 %v303_v34 }
 0x10a   : > { %v901_v52 = vpop.f32.mrb[0].mxu0  ;;  %425 = sbr.rel (%p849_p1) target bundleno = 273 (0x111), region = 48 }
 0x10b   : > { %v902_v53 = vpop.f32.mrb[1].mxu0 }
 0x10c   : > { %v903_v54 = vadd.f32 %v902_v53, %v901_v52 }
 0x10e   : > { %v904_v55 = vpop.f32.mrb[2].mxu0 }
 0x10f   : > { %v905_v56 = vpop.f32.mrb[3].mxu0 }
 0x110   : > { %v906_v57 = vadd.f32 %v905_v56, %v904_v55 }
 0x111 PF: > { %v435_v60 = vld [vmem:[%s1305_s29] sm:$0xff]  ;;  %vm439_vm1 = vcmask 130048   ;;  %v436_v61 = vld [vmem:[%s1305_s29 + $0x8] sm:$0xff]  ;;  %v437_v62 = vld [vmem:[%s1305_s29 + $0x10] sm:$0xff]  ;;  %vm541_vm2 = vcmask 408576   ;;  %p854_p2 = scmp.ne.s32.totalorder %s1135_s24, 1 }
 0x112   : > { %v955_v59 = vpack.c.bf16 %v906_v57, %v903_v54  ;;  %917 = vmatprep.mubr.msk.f32.mxu1 %vm439_vm1, %v435_v60  ;;  %v438_v63 = vld [vmem:[%s1305_s29 + $0x18] sm:$0xff]  ;;  %v432_v0 = vld [vmem:[#allocation2 + $0x8] sm:$0xff]  ;;  %v431_v1 = vld [vmem:[#allocation2] sm:$0xff]  ;;  %v1154_v14 = vmov (!%p854_p2), 0   ;;  %v1155_v34 = vmov (!%p854_p2), 0.0   ;;  %vm620_vm3 = vcmask (!%p854_p2), 1041408  }
 0x113   : > { %v434_v6 = vld [vmem:[#allocation2 + $0x18] sm:$0xff]  ;;  %v433_v7 = vld [vmem:[#allocation2 + $0x10] sm:$0xff]  ;;  %v555_v12 = vld [vmem:[%s1537_s4 + $0x8] sm:$0xff] (!%p854_p2)  ;;  %1056 = vset.pattern.permute.xlu1 (!%p854_p2), %v1154_v14  ;;  %1055 = vset.pattern.permute.xlu0 (!%p854_p2), %v1154_v14 }
 0x114   : > { %956 = vmatprep.subr.bf16.mxu1 %v955_v59  ;;  %v554_v13 = vld [vmem:[%s1537_s4] sm:$0xff] (!%p854_p2)  ;;  %v557_v15 = vld [vmem:[%s1537_s4 + $0x18] sm:$0xff] (!%p854_p2)  ;;  %v556_v16 = vld [vmem:[%s1537_s4 + $0x10] sm:$0xff] (!%p854_p2)  ;;  %565 = vperm.xlu1 (!%p854_p2), %1056, %v555_v12  }
 0x115   : > { %958 = vmatpush3.bf16.msra.mxu1 %v955_v59  ;;  %v595_v17 = vld [vmem:[%s1535_s2 + $0x8] sm:$0xff] (!%p854_p2)  ;;  %v597_v18 = vld [vmem:[%s1535_s2 + $0x18] sm:$0xff] (!%p854_p2)  ;;  %560 = vperm.xlu0 (!%p854_p2), %1055, %v554_v13   ;;  %v594_v20 = vld [vmem:[%s1535_s2] sm:$0xff] (!%p854_p2) }
 0x116   : > { %v959_v19 = vpack.c.bf16 (!%p854_p2), %v597_v18, %v595_v17  ;;  %v596_v21 = vld [vmem:[%s1535_s2 + $0x10] sm:$0xff] (!%p854_p2)  ;;  %v599_v22 = vld [vmem:[%s1535_s2 + $0x28] sm:$0xff] (!%p854_p2)  ;;  %v601_v24 = vld [vmem:[%s1535_s2 + $0x38] sm:$0xff] (!%p854_p2)  ;;  %691 = vmatprep.mubr.f32.mxu0 (!%p854_p2), %v1155_v34 }
 0x117   : > { %v961_v23 = vpack.c.bf16 (!%p854_p2), %v596_v21, %v594_v20  ;;  %v598_v25 = vld [vmem:[%s1535_s2 + $0x20] sm:$0xff] (!%p854_p2)  ;;  %v600_v26 = vld [vmem:[%s1535_s2 + $0x30] sm:$0xff] (!%p854_p2)  ;;  %v963_v27 = vpack.c.bf16 (!%p854_p2), %v601_v24, %v599_v22  ;;  %v603_v29 = vld [vmem:[%s1535_s2 + $0x48] sm:$0xff] (!%p854_p2) }
 0x118   : > { %918 = vmatmul.mubr.msk.f32.vlgmr.msra.gmra.mrb[0].mxu1 %vm439_vm1, %v436_v61  ;;  %960 = vmatprep.subr.bf16.mxu0 (!%p854_p2), %v959_v19  ;;  %v965_v28 = vpack.c.bf16 (!%p854_p2), %v600_v26, %v598_v25  ;;  %v605_v30 = vld [vmem:[%s1535_s2 + $0x58] sm:$0xff] (!%p854_p2)  ;;  %v602_v32 = vld [vmem:[%s1535_s2 + $0x40] sm:$0xff] (!%p854_p2)  ;;  %v604_v33 = vld [vmem:[%s1535_s2 + $0x50] sm:$0xff] (!%p854_p2) }
 0x119   : > { %920 = vmatprep.mubr.msk.f32.mxu1 %vm439_vm1, %v437_v62  ;;  %971 = vmatprep.subr.bf16.mxu1 (!%p854_p2), %v959_v19  ;;  %v967_v31 = vpack.c.bf16 (!%p854_p2), %v605_v30, %v603_v29  ;;  %v969_v35 = vpack.c.bf16 (!%p854_p2), %v604_v33, %v602_v32  ;;  %v607_v36 = vld [vmem:[%s1535_s2 + $0x68] sm:$0x3] (!%p854_p2)  ;;  %v606_v37 = vld [vmem:[%s1535_s2 + $0x60] sm:$0x3] (!%p854_p2)  ;;  %v588_v55 = vld [vmem:[%s1538_s5 + $0x10] sm:$0xff] (!%p854_p2) }
 0x11a   : > { %962 = vmatpush1.bf16.msra.mxu0 (!%p854_p2), %v961_v23  ;;  %975 = vmatpush1.bf16.msra.mxu1 (!%p854_p2), %v961_v23  ;;  %v586_v44 = vld [vmem:[%s1538_s5] sm:$0xff] (!%p854_p2)  ;;  %v587_v49 = vld [vmem:[%s1538_s5 + $0x8] sm:$0xff] (!%p854_p2)  ;;  %v589_v60 = vld [vmem:[%s1538_s5 + $0x18] sm:$0xff] (!%p854_p2) }
 0x11b   : > { %575 = vperm.xlu1 (!%p854_p2), %1056, %v557_v15   ;;  %570 = vperm.xlu0 (!%p854_p2), %1055, %v556_v16  }
 0x11c   : > { %921 = vmatmul.mubr.msk.f32.gmra.mrb[2].mxu1 %vm439_vm1, %v438_v63  ;;  %964 = vmatprep.subr.bf16.mxu0 (!%p854_p2), %v963_v27 }
 0x11d   : > { %972 = vmatprep.subr.bf16.mxu1 (!%p854_p2), %v963_v27  ;;  %703 = vmatprep.mubr.f32.mxu1 (!%p854_p2), %v1155_v34 }
 0x11e   : > { %966 = vmatpush1.bf16.msra.mxu0 (!%p854_p2), %v965_v28  ;;  %976 = vmatpush1.bf16.msra.mxu1 (!%p854_p2), %v965_v28 }
 0x11f   : > { %968 = vmatprep.subr.bf16.mxu0 (!%p854_p2), %v967_v31  ;;  %973 = vmatprep.subr.bf16.mxu1 (!%p854_p2), %v967_v31 }
 0x122   : > { %970 = vmatpush1.bf16.msra.mxu0 (!%p854_p2), %v969_v35  ;;  %977 = vmatpush1.bf16.msra.mxu1 (!%p854_p2), %v969_v35 }
 0x123   : > { %855 = vmatprep.subr.msk.mxu0 (!%p854_p2), %vm620_vm3, %v607_v36  ;;  %974 = vmatprep.subr.msk.mxu1 (!%p854_p2), %vm620_vm3, %v607_v36 }
 0x126   : > { %856 = vmatpush1.msk.msra.mxu0 (!%p854_p2), %vm620_vm3, %v606_v37  ;;  %978 = vmatpush1.msk.msra.mxu1 (!%p854_p2), %vm620_vm3, %v606_v37 }
 0x193   : > { %v566_v40 = vpop.permute.xlu1 (!%p854_p2), %565 }
 0x194   : > { %v561_v41 = vpop.permute.xlu0 (!%p854_p2), %560 }
 0x19a   : > { %v576_v50 = vpop.permute.xlu1 (!%p854_p2), %575  ;;  %v571_v51 = vpop.permute.xlu0 (!%p854_p2), %570 }
 0x1eb   : > { %v919_v2 = vpop.f32.mrb[0].mxu1 }
 0x1ec   : > { %v538_v3 = vadd.f32 %v919_v2, %v432_v0  ;;  %v518_v4 = vpop.f32.mrb[1].mxu1 }
 0x1ed   : > { %v537_v5 = vadd.f32 %v518_v4, %v431_v1  ;;  %549 = sbr.rel (%p854_p2) target bundleno = 731 (0x2db), region = 52 }
 0x1ee   : > { %543 = vst.msk [vmem:[#allocation2 + $0x8] sm:$0xff] %vm541_vm2, %v538_v3 }
 0x1ef   : > { %542 = vst.msk [vmem:[#allocation2] sm:$0xff] %vm541_vm2, %v537_v5  ;;  %v922_v8 = vpop.f32.mrb[2].mxu1 }
 0x1f0   : > { %v540_v9 = vadd.f32 %v922_v8, %v434_v6  ;;  %v528_v10 = vpop.f32.mrb[3].mxu1 }
 0x1f1   : > { %v539_v11 = vadd.f32 %v528_v10, %v433_v7 }
 0x1f2   : > { %545 = vst.msk [vmem:[#allocation2 + $0x18] sm:$0xff] %vm541_vm2, %v540_v9 }
 0x1f3   : > { %544 = vst.msk [vmem:[#allocation2 + $0x10] sm:$0xff] %vm541_vm2, %v539_v11 }
 0x1f5   : > { %v551_v38 = vld [vmem:[#allocation2 + $0x8] sm:$0xff] }
 0x1f6   : > { %v550_v39 = vld [vmem:[#allocation2] sm:$0xff]  ;;  %v579_v42 = vadd.f32 %v566_v40, %v551_v38 }
 0x1f7   : > { %v578_v43 = vadd.f32 %v561_v41, %v550_v39 }
 0x1f8   : > { %v583_v47 = vmax.f32 %v579_v42, 0.0 }
 0x1f9   : > { %v553_v45 = vld [vmem:[#allocation2 + $0x18] sm:$0xff]  ;;  %v582_v48 = vmax.f32 %v578_v43, 0.0 }
 0x1fa   : > { %v552_v46 = vld [vmem:[#allocation2 + $0x10] sm:$0xff]  ;;  %v581_v53 = vadd.f32 %v576_v50, %v553_v45  ;;  %v591_v56 = vmul.f32 %v587_v49, %v583_v47 }
 0x1fb   : > { %v590_v52 = vmul.f32 %v586_v44, %v582_v48  ;;  %v580_v54 = vadd.f32 %v571_v51, %v552_v46 }
 0x1fc   : > { %v585_v58 = vmax.f32 %v581_v53, 0.0 }
 0x1fd   : > { %v584_v57 = vmax.f32 %v580_v54, 0.0  ;;  %857 = vmatmul.mubr.msk.f32.vlgmr.msra.gmra.mrb[0].mxu0 %vm541_vm2, %v590_v52 }
 0x1fe   : > { %697 = vmatprep.mubr.f32.mxu0 %v1155_v34  ;;  %v593_v61 = vmul.f32 %v589_v60, %v585_v58 }
 0x1ff   : > { %v592_v59 = vmul.f32 %v588_v55, %v584_v57 }
 0x201   : > { %858 = vmatmul.mubr.msk.f32.gmra.mrb[2].mxu0 %vm541_vm2, %v591_v56  ;;  %859 = vmatmul.mubr.msk.f32.vlgmr.msra.gmra.mrb[0].mxu1 %vm541_vm2, %v592_v59 }
 0x202   : > { %709 = vmatprep.mubr.f32.mxu1 %v1155_v34 }
 0x205   : > { %860 = vmatmul.mubr.msk.f32.gmra.mrb[2].mxu1 %vm541_vm2, %v593_v61 }
 0x2d0   : > { %v693_v62 = vpop.f32.mrb[0].mxu0 }
 0x2d1   : > { %716 = vst [vmem:[%s1334_s23 + $0x40] sm:$0xff] %v693_v62  ;;  %v695_v63 = vpop.f32.mrb[1].mxu0 }
 0x2d2   : > { %717 = vst [vmem:[%s1334_s23 + $0x48] sm:$0xff] %v695_v63 }
 0x2d4   : > { %v699_v0 = vpop.f32.mrb[2].mxu0  ;;  %v705_v1 = vpop.f32.mrb[0].mxu1 }
 0x2d5   : > { %718 = vst [vmem:[%s1334_s23 + $0x50] sm:$0xff] %v699_v0  ;;  %720 = vst [vmem:[%s1334_s23 + $0x60] sm:$0xff] %v705_v1  ;;  %v701_v2 = vpop.f32.mrb[3].mxu0  ;;  %v707_v3 = vpop.f32.mrb[1].mxu1 }
 0x2d6   : > { %719 = vst [vmem:[%s1334_s23 + $0x58] sm:$0xff] %v701_v2  ;;  %721 = vst [vmem:[%s1334_s23 + $0x68] sm:$0xff] %v707_v3 }
 0x2d8   : > { %v711_v4 = vpop.f32.mrb[2].mxu1 }
 0x2d9   : > { %722 = vst [vmem:[%s1334_s23 + $0x70] sm:$0xff] %v711_v4  ;;  %v713_v5 = vpop.f32.mrb[3].mxu1 }
 0x2da   : > { %723 = vst [vmem:[%s1334_s23 + $0x78] sm:$0xff] %v713_v5 }
 0x2db PF: > { %s868_s24 = sshll.u32 %s1139_s25, 11  ;;  %s738_s8 = sshll.u32 %s1334_s23, 4  ;;  %s1477_s8 = int_to_ptr.vmem [resolvable:$true] %s738_s8 }
 0x2dc   : > { %s1474_s16 = scalar_lea.hbm %s1539_s6, %s868_s24  ;;  %s1555_s18 = sand.u32 1, %s1127_s22  }
 0x2dd   : > { %s1481_s26 = scalar_lea.sflag [#allocation4], %s1555_s18  ;;  %s1057_s15 = scalar_lea.vmem %s1477_s8, 2048 }
 0x2de   : > { %p1058_p4 = scmp.ne.s32.totalorder %s1477_s8, %s1057_s15  ;;  %s1156_s25 = smov [#allocation3]  }
 0x2df   : > { %s1061_s14 = sshll.u32 %s1156_s25, 4  ;;  %s1062_s14 = int_to_ptr.vmem [resolvable:$false] %s1061_s14 }
 0x2e0   : > { %p1059_p5 = pnand %p1058_p4, %p1243_p3  ;;  %s1063_s20 = scalar_lea.vmem %s1062_s14, 4096 }
 0x2e1   : > { %p1064_p7 = scmp.lt.s32.totalorder %s1477_s8, %s1062_s14  ;;  %p1065_p8 = scmp.lt.s32.totalorder %s1063_s20, %s1057_s15 }
 0x2e2   : > { %p1060_p6 = pneg %p1059_p5 }
 0x2e3   : > { %p1066_p10 = por %p1065_p8, %p1064_p7 }
 0x2e5   : > { %p1067_p11 = pnand %p1066_p10, %p1060_p6 }
 0x2e7   : > { %1070 = shalt.err (!%p1067_p11)
}
 0x2e8   : > { %s1071_s23 = scalar_lea.hbm %s1474_s16, 2048  ;;  %s1075_s11 = scalar_lea.hbm %s1539_s6, 4096 }
 0x2e9   : > { %p1072_p12 = scmp.ne.s32.totalorder %s1474_s16, %s1071_s23  ;;  %p1076_p1 = scmp.lt.u32.totalorder %s1474_s16, %s1539_s6 }
 0x2ea   : > { %p1077_p2 = scmp.lt.u32.totalorder %s1075_s11, %s1071_s23  ;;  %p1079_p5 = scmp.lt.u32.totalorder %s1071_s23, %s1474_s16 }
 0x2eb   : > { %p1073_p13 = pnand %p1072_p12, %p1243_p3 }
 0x2ec   : > { %p1078_p4 = por %p1077_p2, %p1076_p1 }
 0x2ed   : > { %p1074_p0 = pneg %p1073_p13 }
 0x2ee   : > { %p1080_p6 = por %p1079_p5, %p1078_p4 }
 0x2f0   : > { %p1081_p7 = pnand %p1080_p6, %p1074_p0 }
 0x2f2   : > { %1084 = shalt.err (!%p1081_p7)
}
 0x2f3   : > { %s1157_s7 = smov 256   ;;  %s1158_s12 = smov 16  }
 0x2f4   : > { %979 = dma.vmem_to_hbm [thread:$0]  (%p1243_p3), %s1477_s8, 2048, %s1474_s16, %s1481_s26, %s1157_s7, %s1157_s7, %s1158_s12  }
 0x2f5 PF: > { %p985_p8 = scmp.ge.s32.totalorder %s1151_s28, 2  ;;  %s753_s27 = sand.u32 1, %s1123_s21  }
 0x2f6   : > { %s754_s24 = scalar_lea.sflag [#allocation4], %s753_s27 }
 0x2f7   : > { %p982_p10 = pnand %p985_p8, %p1253_p9 }
 0x2f9   : > { %1118 = dma.done.wait (!%p982_p10), %s754_s24, 2048  }
 0x2fa   : > { %1120 = vsyncadd (!%p982_p10), %s754_s24, 4294965248  ;;  %s19_s28 = sadd.s32 1, %s1151_s28   ;;  %s1556_s3 = sld [smem:[#allocation6_spill]] }
 0x2fb   : > { %p16_p11 = scmp.ge.s32.totalorder %s19_s28, 6   ;;  %s1557_s23 = sld [smem:[#allocation11_spill]] }
 0x2fc   : > { %s1558_s24 = sld [smem:[#allocation7_spill]]  ;;  %s1559_s25 = sld [smem:[#allocation8_spill]] }
 0x2fd   : > { %s1560_s26 = sld [smem:[#allocation9_spill]]  ;;  %s1561_s27 = sld [smem:[#allocation10_spill]] }
 0x2fe   : > { %s1562_s21 = smov %s1127_s22  ;;  %18 = sbr.rel (!%p16_p11) target bundleno = 7 (0x7), region = 91 }
 0x300   : > { %s1563_s22 = smov %s1556_s3 }
 0x305   :  { %759 = vsyncpa [#allocation4], 1 }
 0x306   :  { %761 = vsyncpa [#allocation4 + $0x1], 1 }

</bundles_post_ra>
